<compile_context>
chip_gen: v5e
topology: v5e:2x2
jax: 0.10.0
libtpu: 0.0.40
codegen_flags: <defaults>
</compile_context>

<pallas_src>
import functools

import jax
import jax.numpy as jnp
from jax.experimental import pallas as pl
from jax.experimental.pallas import tpu as pltpu


# ---------------------------------------------------------------------------
# Fused Pallas kernel (one batch element per grid step)
# ---------------------------------------------------------------------------
def _bottleneck_kernel(x_ref, w1_ref, s1_ref, b1_ref,
                       w2_ref, s2_ref, b2_ref, mask_ref, sel_ref,
                       w3_ref, s3_ref, b3_ref, wd_ref, sd_ref, bd_ref,
                       o_ref, *, shifts):
    """All tiles are (channels, H*W): the lane axis carries the spatial dim."""
    x = x_ref[0]                                                    # (Cin, HW)

    # conv1 (1x1) + bn1 + relu — one MXU matmul over every pixel.
    out1 = jnp.dot(w1_ref[...], x, preferred_element_type=jnp.float32)
    out1 = jnp.maximum(out1 * s1_ref[...] + b1_ref[...], 0.0)       # (P8, HW)

    # conv2 (3x3, pad=1) + bn2 + relu as ONE im2col matmul.  Each tap is a
    # lane roll of out1; wrap-around pixels are killed by the border mask.
    masks = mask_ref[...]                                           # (9, HW)
    taps = []
    for t, k in enumerate(shifts):
        shifted = out1 if k == 0 else pltpu.roll(out1, k, axis=1)
        taps.append(shifted * masks[t:t + 1, :])
    cols = jnp.concatenate(taps, axis=0)                            # (9*P8, HW)
    out2 = jnp.dot(w2_ref[...], cols, preferred_element_type=jnp.float32)
    out2 = jnp.maximum(out2 * s2_ref[...] + b2_ref[...], 0.0)       # (plane, HW)

    # Stride-s spatial subsample folded in as a 0/1 selection matmul.
    sel = sel_ref[...]                                              # (HW, HoWo)
    out2s = jnp.dot(out2, sel, preferred_element_type=jnp.float32)  # (plane, HoWo)
    xs = jnp.dot(x, sel, preferred_element_type=jnp.float32)        # (Cin, HoWo)

    # conv3 (1x1) + bn3 ; downsampler (1x1 conv + bn) ; add ; relu.
    y = jnp.dot(w3_ref[...], out2s, preferred_element_type=jnp.float32)
    y = y * s3_ref[...] + b3_ref[...]
    r = jnp.dot(wd_ref[...], xs, preferred_element_type=jnp.float32)
    r = r * sd_ref[...] + bd_ref[...]
    o_ref[0] = jnp.maximum(y + r, 0.0).astype(o_ref.dtype)


# ---------------------------------------------------------------------------
# Wrapper
# ---------------------------------------------------------------------------
def fold_bn(gamma, beta, mean, var, conv_bias, eps=1e-5):
    scale = gamma / jnp.sqrt(var + eps)
    bias = (conv_bias - mean) * scale + beta
    return scale, bias


def bottleneck_forward(x_nchw, p, stride):
    N, cin, H, W = x_nchw.shape
    plane = p["w1"].shape[0]
    out_ch = p["w3"].shape[0]
    HW = H * W
    Ho = (H - 1) // stride + 1
    Wo = (W - 1) // stride + 1
    HoWo = Ho * Wo
    plane_p = ((plane + 7) // 8) * 8     # pad conv1 out-channels to a sublane tile
    pad = plane_p - plane

    s1, f1 = fold_bn(*p["bn1"], p["b1"])
    s2, f2 = fold_bn(*p["bn2"], p["b2"])
    s3, f3 = fold_bn(*p["bn3"], p["b3"])
    sd, fd = fold_bn(*p["bnd"], p["bd"])

    # Matmul-form weights (channels-first).  conv1 out-channels padded to 8 so
    # the 9-tap concat in the kernel is sublane-tile aligned.
    w1m = jnp.pad(p["w1"][:, :, 0, 0], ((0, pad), (0, 0)))          # (P8, Cin)
    s1p = jnp.pad(s1, (0, pad)).reshape(-1, 1)
    f1p = jnp.pad(f1, (0, pad)).reshape(-1, 1)
    w2m = p["w2"].transpose(0, 2, 3, 1).reshape(plane, 9, plane)    # (co, tap, ci)
    w2m = jnp.pad(w2m, ((0, 0), (0, 0), (0, pad))).reshape(plane, 9 * plane_p)
    w3m = p["w3"][:, :, 0, 0]                                       # (out_ch, plane)
    wdm = p["wd"][:, :, 0, 0]                                       # (out_ch, Cin)

    # 3x3 tap lane-shifts and border masks (precomputed, resident in VMEM).
    hh = jnp.arange(H)[:, None]
    ww = jnp.arange(W)[None, :]
    shifts, masks = [], []
    for dy in (-1, 0, 1):
        for dx in (-1, 0, 1):
            shifts.append((-(dy * W + dx)) % HW)
            valid = ((hh + dy >= 0) & (hh + dy < H) &
                     (ww + dx >= 0) & (ww + dx < W))
            masks.append(valid.reshape(-1).astype(jnp.float32))
    masks = jnp.stack(masks, axis=0)                                # (9, HW)

    # 0/1 selection matrix implementing the stride-`stride` spatial subsample.
    src = (jnp.arange(Ho) * stride)[:, None] * W + (jnp.arange(Wo) * stride)[None, :]
    sel = (jnp.arange(HW)[:, None] == src.reshape(-1)[None, :]).astype(jnp.float32)

    x_flat = x_nchw.reshape(N, cin, HW)
    col = lambda v: v.reshape(-1, 1)
    const = lambda a: pl.BlockSpec(a.shape, lambda n, _nd=a.ndim: (0,) * _nd)

    consts = (w1m, s1p, f1p, w2m, col(s2), col(f2), masks, sel,
              w3m, col(s3), col(f3), wdm, col(sd), col(fd))

    flops = (2 * N * HW * (cin * plane_p + 9 * plane_p * plane)
             + 2 * N * HoWo * (HW * (plane + cin) + plane * out_ch + cin * out_ch))
    bytes_accessed = 4 * (x_flat.size + N * out_ch * HoWo
                          + sum(int(a.size) for a in consts))

    out = pl.pallas_call(
        functools.partial(_bottleneck_kernel, shifts=tuple(shifts)),
        out_shape=jax.ShapeDtypeStruct((N, out_ch, HoWo), jnp.float32),
        grid=(N,),
        in_specs=[pl.BlockSpec((1, cin, HW), lambda n: (n, 0, 0))]
                 + [const(a) for a in consts],
        out_specs=pl.BlockSpec((1, out_ch, HoWo), lambda n: (n, 0, 0)),
        compiler_params=pltpu.CompilerParams(
            dimension_semantics=("parallel",),
            vmem_limit_bytes=32 * 1024 * 1024),
        cost_estimate=pl.CostEstimate(flops=int(flops), transcendentals=0,
                                      bytes_accessed=int(bytes_accessed)),
    )(x_flat, *consts)

    return out.reshape(N, out_ch, Ho, Wo)


# ---------------------------------------------------------------------------
# Pure-JAX reference (NCHW, mirrors the PyTorch module with inference-mode BN)
# ---------------------------------------------------------------------------
def bottleneck_reference(x, p, stride, eps=1e-5):
    def conv(v, w, b, s=1, pad=0):
        y = jax.lax.conv_general_dilated(
            v, w, window_strides=(s, s), padding=((pad, pad), (pad, pad)),
            dimension_numbers=("NCHW", "OIHW", "NCHW"))
        return y + b[None, :, None, None]

    def bn(y, stats):
        gamma, beta, mean, var = stats
        inv = (gamma / jnp.sqrt(var + eps))[None, :, None, None]
        return (y - mean[None, :, None, None]) * inv + beta[None, :, None, None]

    out = jax.nn.relu(bn(conv(x, p["w1"], p["b1"]), p["bn1"]))
    out = jax.nn.relu(bn(conv(out, p["w2"], p["b2"], pad=1), p["bn2"]))
    out = bn(conv(out, p["w3"], p["b3"], s=stride), p["bn3"])
    res = bn(conv(x, p["wd"], p["bd"], s=stride), p["bnd"])
    return jax.nn.relu(out + res)


# ---------------------------------------------------------------------------
# Deterministic parameter init + run
# ---------------------------------------------------------------------------
def make_bn(key, c):
    k1, k2, k3, k4 = jax.random.split(key, 4)
    gamma = 1.0 + 0.1 * jax.random.normal(k1, (c,), jnp.float32)
    beta = 0.1 * jax.random.normal(k2, (c,), jnp.float32)
    mean = 0.1 * jax.random.normal(k3, (c,), jnp.float32)
    var = 0.5 + jnp.abs(jax.random.normal(k4, (c,), jnp.float32))
    return (gamma, beta, mean, var)


if __name__ == "__main__":
    key = jax.random.PRNGKey(0)
    N, H, W = 2, 16, 16
    in_ch, plane = 8, 4
    is_downsampling = True
    out_ch = plane * 4
    stride = 2 if is_downsampling else 1

    ks = jax.random.split(key, 16)
    x = jax.random.normal(ks[0], (N, in_ch, H, W), jnp.float32)     # NCHW

    params = {
        # conv weights in PyTorch OIHW layout
        "w1": 0.1 * jax.random.normal(ks[1], (plane, in_ch, 1, 1), jnp.float32),
        "b1": 0.1 * jax.random.normal(ks[2], (plane,), jnp.float32),
        "w2": 0.1 * jax.random.normal(ks[3], (plane, plane, 3, 3), jnp.float32),
        "b2": 0.1 * jax.random.normal(ks[4], (plane,), jnp.float32),
        "w3": 0.1 * jax.random.normal(ks[5], (out_ch, plane, 1, 1), jnp.float32),
        "b3": 0.1 * jax.random.normal(ks[6], (out_ch,), jnp.float32),
        "wd": 0.1 * jax.random.normal(ks[7], (out_ch, in_ch, 1, 1), jnp.float32),
        "bd": 0.1 * jax.random.normal(ks[8], (out_ch,), jnp.float32),
        "bn1": make_bn(ks[9], plane),
        "bn2": make_bn(ks[10], plane),
        "bn3": make_bn(ks[11], out_ch),
        "bnd": make_bn(ks[12], out_ch),
    }

    out = jax.block_until_ready(bottleneck_forward(x, params, stride))
    ref = bottleneck_reference(x, params, stride)

    assert out.shape == (N, out_ch, H // stride, W // stride), out.shape
    max_err = float(jnp.max(jnp.abs(out - ref)))
    assert jnp.allclose(out, ref, atol=1e-3, rtol=1e-3), max_err

    print("KERNEL_OK")
</pallas_src>

<mosaic_0001>
module attributes {stable_mosaic.version = 11 : i64} {
  func.func @_bottleneck_kernel(%arg0: i32, %arg1: memref<1x8x256xf32, #tpu.memory_space<vmem>>, %arg2: memref<8x8xf32, #tpu.memory_space<vmem>>, %arg3: memref<8x1xf32, #tpu.memory_space<vmem>>, %arg4: memref<8x1xf32, #tpu.memory_space<vmem>>, %arg5: memref<4x72xf32, #tpu.memory_space<vmem>>, %arg6: memref<4x1xf32, #tpu.memory_space<vmem>>, %arg7: memref<4x1xf32, #tpu.memory_space<vmem>>, %arg8: memref<9x256xf32, #tpu.memory_space<vmem>>, %arg9: memref<256x64xf32, #tpu.memory_space<vmem>>, %arg10: memref<16x4xf32, #tpu.memory_space<vmem>>, %arg11: memref<16x1xf32, #tpu.memory_space<vmem>>, %arg12: memref<16x1xf32, #tpu.memory_space<vmem>>, %arg13: memref<16x8xf32, #tpu.memory_space<vmem>>, %arg14: memref<16x1xf32, #tpu.memory_space<vmem>>, %arg15: memref<16x1xf32, #tpu.memory_space<vmem>>, %arg16: memref<1x16x64xf32, #tpu.memory_space<vmem>>) attributes {dimension_semantics = [#tpu.dimension_semantics<parallel>], iteration_bounds = array<i64: 2>, scalar_prefetch = 0 : i64, scratch_operands = 0 : i64, tpu.core_type = #tpu.core_type<tc>, window_params = [{transform_indices = @transform_0, window_bounds = array<i64: 1, 8, 256>}, {pipeline_mode = #tpu.pipeline_mode<synchronous>, transform_indices = @transform_1, window_bounds = array<i64: 8, 8>}, {pipeline_mode = #tpu.pipeline_mode<synchronous>, transform_indices = @transform_2, window_bounds = array<i64: 8, 1>}, {pipeline_mode = #tpu.pipeline_mode<synchronous>, transform_indices = @transform_3, window_bounds = array<i64: 8, 1>}, {pipeline_mode = #tpu.pipeline_mode<synchronous>, transform_indices = @transform_4, window_bounds = array<i64: 4, 72>}, {pipeline_mode = #tpu.pipeline_mode<synchronous>, transform_indices = @transform_5, window_bounds = array<i64: 4, 1>}, {pipeline_mode = #tpu.pipeline_mode<synchronous>, transform_indices = @transform_6, window_bounds = array<i64: 4, 1>}, {pipeline_mode = #tpu.pipeline_mode<synchronous>, transform_indices = @transform_7, window_bounds = array<i64: 9, 256>}, {pipeline_mode = #tpu.pipeline_mode<synchronous>, transform_indices = @transform_8, window_bounds = array<i64: 256, 64>}, {pipeline_mode = #tpu.pipeline_mode<synchronous>, transform_indices = @transform_9, window_bounds = array<i64: 16, 4>}, {pipeline_mode = #tpu.pipeline_mode<synchronous>, transform_indices = @transform_10, window_bounds = array<i64: 16, 1>}, {pipeline_mode = #tpu.pipeline_mode<synchronous>, transform_indices = @transform_11, window_bounds = array<i64: 16, 1>}, {pipeline_mode = #tpu.pipeline_mode<synchronous>, transform_indices = @transform_12, window_bounds = array<i64: 16, 8>}, {pipeline_mode = #tpu.pipeline_mode<synchronous>, transform_indices = @transform_13, window_bounds = array<i64: 16, 1>}, {pipeline_mode = #tpu.pipeline_mode<synchronous>, transform_indices = @transform_14, window_bounds = array<i64: 16, 1>}, {transform_indices = @transform_15, window_bounds = array<i64: 1, 16, 64>}]} {
    %c0 = arith.constant 0 : index
    %c0_0 = arith.constant 0 : index
    %c0_1 = arith.constant 0 : index
    %0 = vector.load %arg1[%c0, %c0_0, %c0_1] : memref<1x8x256xf32, #tpu.memory_space<vmem>>, vector<1x8x256xf32>
    %1 = vector.shape_cast %0 : vector<1x8x256xf32> to vector<8x256xf32>
    %c0_2 = arith.constant 0 : index
    %c0_3 = arith.constant 0 : index
    %2 = vector.load %arg2[%c0_2, %c0_3] : memref<8x8xf32, #tpu.memory_space<vmem>>, vector<8x8xf32>
    %cst = arith.constant dense<0.000000e+00> : vector<8x256xf32>
    %3 = tpu.matmul %2, %1, %cst {dimension_numbers = #tpu.dot_dimension_numbers<[1], [0], [0], [1], [0, 0, 1, 1], [], []>} : vector<8x8xf32>, vector<8x256xf32>, vector<8x256xf32> -> vector<8x256xf32>
    %c0_4 = arith.constant 0 : index
    %c0_5 = arith.constant 0 : index
    %4 = vector.load %arg3[%c0_4, %c0_5] : memref<8x1xf32, #tpu.memory_space<vmem>>, vector<8x1xf32>
    %5 = vector.broadcast %4 : vector<8x1xf32> to vector<8x256xf32>
    %6 = arith.mulf %3, %5 : vector<8x256xf32>
    %c0_6 = arith.constant 0 : index
    %c0_7 = arith.constant 0 : index
    %7 = vector.load %arg4[%c0_6, %c0_7] : memref<8x1xf32, #tpu.memory_space<vmem>>, vector<8x1xf32>
    %8 = vector.broadcast %7 : vector<8x1xf32> to vector<8x256xf32>
    %9 = arith.addf %6, %8 : vector<8x256xf32>
    %cst_8 = arith.constant 0.000000e+00 : f32
    %10 = vector.broadcast %cst_8 : f32 to vector<8x256xf32>
    %11 = arith.maximumf %9, %10 : vector<8x256xf32>
    %c0_9 = arith.constant 0 : index
    %c0_10 = arith.constant 0 : index
    %12 = vector.load %arg8[%c0_9, %c0_10] : memref<9x256xf32, #tpu.memory_space<vmem>>, vector<9x256xf32>
    %c17_i32 = arith.constant 17 : i32
    %13 = tpu.dynamic_rotate %11 by %c17_i32 dim 1 : vector<8x256xf32>, i32 -> vector<8x256xf32>
    %14 = vector.extract_strided_slice %12 {offsets = [0, 0], sizes = [1, 256], strides = [1, 1]} : vector<9x256xf32> to vector<1x256xf32>
    %15 = vector.broadcast %14 : vector<1x256xf32> to vector<8x256xf32>
    %16 = arith.mulf %13, %15 : vector<8x256xf32>
    %c16_i32 = arith.constant 16 : i32
    %17 = tpu.dynamic_rotate %11 by %c16_i32 dim 1 : vector<8x256xf32>, i32 -> vector<8x256xf32>
    %18 = vector.extract_strided_slice %12 {offsets = [1, 0], sizes = [1, 256], strides = [1, 1]} : vector<9x256xf32> to vector<1x256xf32>
    %19 = vector.broadcast %18 : vector<1x256xf32> to vector<8x256xf32>
    %20 = arith.mulf %17, %19 : vector<8x256xf32>
    %c15_i32 = arith.constant 15 : i32
    %21 = tpu.dynamic_rotate %11 by %c15_i32 dim 1 : vector<8x256xf32>, i32 -> vector<8x256xf32>
    %22 = vector.extract_strided_slice %12 {offsets = [2, 0], sizes = [1, 256], strides = [1, 1]} : vector<9x256xf32> to vector<1x256xf32>
    %23 = vector.broadcast %22 : vector<1x256xf32> to vector<8x256xf32>
    %24 = arith.mulf %21, %23 : vector<8x256xf32>
    %c1_i32 = arith.constant 1 : i32
    %25 = tpu.dynamic_rotate %11 by %c1_i32 dim 1 : vector<8x256xf32>, i32 -> vector<8x256xf32>
    %26 = vector.extract_strided_slice %12 {offsets = [3, 0], sizes = [1, 256], strides = [1, 1]} : vector<9x256xf32> to vector<1x256xf32>
    %27 = vector.broadcast %26 : vector<1x256xf32> to vector<8x256xf32>
    %28 = arith.mulf %25, %27 : vector<8x256xf32>
    %29 = vector.extract_strided_slice %12 {offsets = [4, 0], sizes = [1, 256], strides = [1, 1]} : vector<9x256xf32> to vector<1x256xf32>
    %30 = vector.broadcast %29 : vector<1x256xf32> to vector<8x256xf32>
    %31 = arith.mulf %11, %30 : vector<8x256xf32>
    %c255_i32 = arith.constant 255 : i32
    %32 = tpu.dynamic_rotate %11 by %c255_i32 dim 1 : vector<8x256xf32>, i32 -> vector<8x256xf32>
    %33 = vector.extract_strided_slice %12 {offsets = [5, 0], sizes = [1, 256], strides = [1, 1]} : vector<9x256xf32> to vector<1x256xf32>
    %34 = vector.broadcast %33 : vector<1x256xf32> to vector<8x256xf32>
    %35 = arith.mulf %32, %34 : vector<8x256xf32>
    %c241_i32 = arith.constant 241 : i32
    %36 = tpu.dynamic_rotate %11 by %c241_i32 dim 1 : vector<8x256xf32>, i32 -> vector<8x256xf32>
    %37 = vector.extract_strided_slice %12 {offsets = [6, 0], sizes = [1, 256], strides = [1, 1]} : vector<9x256xf32> to vector<1x256xf32>
    %38 = vector.broadcast %37 : vector<1x256xf32> to vector<8x256xf32>
    %39 = arith.mulf %36, %38 : vector<8x256xf32>
    %c240_i32 = arith.constant 240 : i32
    %40 = tpu.dynamic_rotate %11 by %c240_i32 dim 1 : vector<8x256xf32>, i32 -> vector<8x256xf32>
    %41 = vector.extract_strided_slice %12 {offsets = [7, 0], sizes = [1, 256], strides = [1, 1]} : vector<9x256xf32> to vector<1x256xf32>
    %42 = vector.broadcast %41 : vector<1x256xf32> to vector<8x256xf32>
    %43 = arith.mulf %40, %42 : vector<8x256xf32>
    %c239_i32 = arith.constant 239 : i32
    %44 = tpu.dynamic_rotate %11 by %c239_i32 dim 1 : vector<8x256xf32>, i32 -> vector<8x256xf32>
    %45 = vector.extract_strided_slice %12 {offsets = [8, 0], sizes = [1, 256], strides = [1, 1]} : vector<9x256xf32> to vector<1x256xf32>
    %46 = vector.broadcast %45 : vector<1x256xf32> to vector<8x256xf32>
    %47 = arith.mulf %44, %46 : vector<8x256xf32>
    %48 = tpu.concatenate %16, %20, %24, %28, %31, %35, %39, %43, %47 in 0 : vector<8x256xf32>, vector<8x256xf32>, vector<8x256xf32>, vector<8x256xf32>, vector<8x256xf32>, vector<8x256xf32>, vector<8x256xf32>, vector<8x256xf32>, vector<8x256xf32> -> vector<72x256xf32>
    %c0_11 = arith.constant 0 : index
    %c0_12 = arith.constant 0 : index
    %49 = vector.load %arg5[%c0_11, %c0_12] : memref<4x72xf32, #tpu.memory_space<vmem>>, vector<4x72xf32>
    %cst_13 = arith.constant dense<0.000000e+00> : vector<4x256xf32>
    %50 = tpu.matmul %49, %48, %cst_13 {dimension_numbers = #tpu.dot_dimension_numbers<[1], [0], [0], [1], [0, 0, 1, 1], [], []>} : vector<4x72xf32>, vector<72x256xf32>, vector<4x256xf32> -> vector<4x256xf32>
    %c0_14 = arith.constant 0 : index
    %c0_15 = arith.constant 0 : index
    %51 = vector.load %arg6[%c0_14, %c0_15] : memref<4x1xf32, #tpu.memory_space<vmem>>, vector<4x1xf32>
    %52 = vector.broadcast %51 : vector<4x1xf32> to vector<4x256xf32>
    %53 = arith.mulf %50, %52 : vector<4x256xf32>
    %c0_16 = arith.constant 0 : index
    %c0_17 = arith.constant 0 : index
    %54 = vector.load %arg7[%c0_16, %c0_17] : memref<4x1xf32, #tpu.memory_space<vmem>>, vector<4x1xf32>
    %55 = vector.broadcast %54 : vector<4x1xf32> to vector<4x256xf32>
    %56 = arith.addf %53, %55 : vector<4x256xf32>
    %cst_18 = arith.constant 0.000000e+00 : f32
    %57 = vector.broadcast %cst_18 : f32 to vector<4x256xf32>
    %58 = arith.maximumf %56, %57 : vector<4x256xf32>
    %c0_19 = arith.constant 0 : index
    %c0_20 = arith.constant 0 : index
    %59 = vector.load %arg9[%c0_19, %c0_20] : memref<256x64xf32, #tpu.memory_space<vmem>>, vector<256x64xf32>
    %cst_21 = arith.constant dense<0.000000e+00> : vector<4x64xf32>
    %60 = tpu.matmul %58, %59, %cst_21 {dimension_numbers = #tpu.dot_dimension_numbers<[1], [0], [0], [1], [0, 0, 1, 1], [], []>} : vector<4x256xf32>, vector<256x64xf32>, vector<4x64xf32> -> vector<4x64xf32>
    %cst_22 = arith.constant dense<0.000000e+00> : vector<8x64xf32>
    %61 = tpu.matmul %1, %59, %cst_22 {dimension_numbers = #tpu.dot_dimension_numbers<[1], [0], [0], [1], [0, 0, 1, 1], [], []>} : vector<8x256xf32>, vector<256x64xf32>, vector<8x64xf32> -> vector<8x64xf32>
    %c0_23 = arith.constant 0 : index
    %c0_24 = arith.constant 0 : index
    %62 = vector.load %arg10[%c0_23, %c0_24] : memref<16x4xf32, #tpu.memory_space<vmem>>, vector<16x4xf32>
    %cst_25 = arith.constant dense<0.000000e+00> : vector<16x64xf32>
    %63 = tpu.matmul %62, %60, %cst_25 {dimension_numbers = #tpu.dot_dimension_numbers<[1], [0], [0], [1], [0, 0, 1, 1], [], []>} : vector<16x4xf32>, vector<4x64xf32>, vector<16x64xf32> -> vector<16x64xf32>
    %c0_26 = arith.constant 0 : index
    %c0_27 = arith.constant 0 : index
    %64 = vector.load %arg11[%c0_26, %c0_27] : memref<16x1xf32, #tpu.memory_space<vmem>>, vector<16x1xf32>
    %65 = vector.broadcast %64 : vector<16x1xf32> to vector<16x64xf32>
    %66 = arith.mulf %63, %65 : vector<16x64xf32>
    %c0_28 = arith.constant 0 : index
    %c0_29 = arith.constant 0 : index
    %67 = vector.load %arg12[%c0_28, %c0_29] : memref<16x1xf32, #tpu.memory_space<vmem>>, vector<16x1xf32>
    %68 = vector.broadcast %67 : vector<16x1xf32> to vector<16x64xf32>
    %69 = arith.addf %66, %68 : vector<16x64xf32>
    %c0_30 = arith.constant 0 : index
    %c0_31 = arith.constant 0 : index
    %70 = vector.load %arg13[%c0_30, %c0_31] : memref<16x8xf32, #tpu.memory_space<vmem>>, vector<16x8xf32>
    %cst_32 = arith.constant dense<0.000000e+00> : vector<16x64xf32>
    %71 = tpu.matmul %70, %61, %cst_32 {dimension_numbers = #tpu.dot_dimension_numbers<[1], [0], [0], [1], [0, 0, 1, 1], [], []>} : vector<16x8xf32>, vector<8x64xf32>, vector<16x64xf32> -> vector<16x64xf32>
    %c0_33 = arith.constant 0 : index
    %c0_34 = arith.constant 0 : index
    %72 = vector.load %arg14[%c0_33, %c0_34] : memref<16x1xf32, #tpu.memory_space<vmem>>, vector<16x1xf32>
    %73 = vector.broadcast %72 : vector<16x1xf32> to vector<16x64xf32>
    %74 = arith.mulf %71, %73 : vector<16x64xf32>
    %c0_35 = arith.constant 0 : index
    %c0_36 = arith.constant 0 : index
    %75 = vector.load %arg15[%c0_35, %c0_36] : memref<16x1xf32, #tpu.memory_space<vmem>>, vector<16x1xf32>
    %76 = vector.broadcast %75 : vector<16x1xf32> to vector<16x64xf32>
    %77 = arith.addf %74, %76 : vector<16x64xf32>
    %78 = arith.addf %69, %77 : vector<16x64xf32>
    %cst_37 = arith.constant 0.000000e+00 : f32
    %79 = vector.broadcast %cst_37 : f32 to vector<16x64xf32>
    %80 = arith.maximumf %78, %79 : vector<16x64xf32>
    %c0_38 = arith.constant 0 : index
    %c0_39 = arith.constant 0 : index
    %c0_40 = arith.constant 0 : index
    %81 = vector.load %arg16[%c0_38, %c0_39, %c0_40] : memref<1x16x64xf32, #tpu.memory_space<vmem>>, vector<1x16x64xf32>
    %82 = vector.shape_cast %81 : vector<1x16x64xf32> to vector<16x64xf32>
    %83 = vector.shape_cast %80 : vector<16x64xf32> to vector<1x16x64xf32>
    tpu.vector_store %arg16[%c0_38, %c0_39, %c0_40], %83 {strides = array<i32>} : memref<1x16x64xf32, #tpu.memory_space<vmem>>, vector<1x16x64xf32>,
    return
  }
  func.func @transform_0(%arg0: i32) -> (i32, i32, i32) {
    %c0_i32 = arith.constant 0 : i32
    %c0_i32_0 = arith.constant 0 : i32
    %c0_i32_1 = arith.constant 0 : i32
    return %arg0, %c0_i32, %c0_i32_0 : i32, i32, i32
  }
  func.func @transform_1(%arg0: i32) -> (i32, i32) {
    %c0_i32 = arith.constant 0 : i32
    %c0_i32_0 = arith.constant 0 : i32
    %c0_i32_1 = arith.constant 0 : i32
    return %c0_i32, %c0_i32_0 : i32, i32
  }
  func.func @transform_2(%arg0: i32) -> (i32, i32) {
    %c0_i32 = arith.constant 0 : i32
    %c0_i32_0 = arith.constant 0 : i32
    %c0_i32_1 = arith.constant 0 : i32
    return %c0_i32, %c0_i32_0 : i32, i32
  }
  func.func @transform_3(%arg0: i32) -> (i32, i32) {
    %c0_i32 = arith.constant 0 : i32
    %c0_i32_0 = arith.constant 0 : i32
    %c0_i32_1 = arith.constant 0 : i32
    return %c0_i32, %c0_i32_0 : i32, i32
  }
  func.func @transform_4(%arg0: i32) -> (i32, i32) {
    %c0_i32 = arith.constant 0 : i32
    %c0_i32_0 = arith.constant 0 : i32
    %c0_i32_1 = arith.constant 0 : i32
    return %c0_i32, %c0_i32_0 : i32, i32
  }
  func.func @transform_5(%arg0: i32) -> (i32, i32) {
    %c0_i32 = arith.constant 0 : i32
    %c0_i32_0 = arith.constant 0 : i32
    %c0_i32_1 = arith.constant 0 : i32
    return %c0_i32, %c0_i32_0 : i32, i32
  }
  func.func @transform_6(%arg0: i32) -> (i32, i32) {
    %c0_i32 = arith.constant 0 : i32
    %c0_i32_0 = arith.constant 0 : i32
    %c0_i32_1 = arith.constant 0 : i32
    return %c0_i32, %c0_i32_0 : i32, i32
  }
  func.func @transform_7(%arg0: i32) -> (i32, i32) {
    %c0_i32 = arith.constant 0 : i32
    %c0_i32_0 = arith.constant 0 : i32
    %c0_i32_1 = arith.constant 0 : i32
    return %c0_i32, %c0_i32_0 : i32, i32
  }
  func.func @transform_8(%arg0: i32) -> (i32, i32) {
    %c0_i32 = arith.constant 0 : i32
    %c0_i32_0 = arith.constant 0 : i32
    %c0_i32_1 = arith.constant 0 : i32
    return %c0_i32, %c0_i32_0 : i32, i32
  }
  func.func @transform_9(%arg0: i32) -> (i32, i32) {
    %c0_i32 = arith.constant 0 : i32
    %c0_i32_0 = arith.constant 0 : i32
    %c0_i32_1 = arith.constant 0 : i32
    return %c0_i32, %c0_i32_0 : i32, i32
  }
  func.func @transform_10(%arg0: i32) -> (i32, i32) {
    %c0_i32 = arith.constant 0 : i32
    %c0_i32_0 = arith.constant 0 : i32
    %c0_i32_1 = arith.constant 0 : i32
    return %c0_i32, %c0_i32_0 : i32, i32
  }
  func.func @transform_11(%arg0: i32) -> (i32, i32) {
    %c0_i32 = arith.constant 0 : i32
    %c0_i32_0 = arith.constant 0 : i32
    %c0_i32_1 = arith.constant 0 : i32
    return %c0_i32, %c0_i32_0 : i32, i32
  }
  func.func @transform_12(%arg0: i32) -> (i32, i32) {
    %c0_i32 = arith.constant 0 : i32
    %c0_i32_0 = arith.constant 0 : i32
    %c0_i32_1 = arith.constant 0 : i32
    return %c0_i32, %c0_i32_0 : i32, i32
  }
  func.func @transform_13(%arg0: i32) -> (i32, i32) {
    %c0_i32 = arith.constant 0 : i32
    %c0_i32_0 = arith.constant 0 : i32
    %c0_i32_1 = arith.constant 0 : i32
    return %c0_i32, %c0_i32_0 : i32, i32
  }
  func.func @transform_14(%arg0: i32) -> (i32, i32) {
    %c0_i32 = arith.constant 0 : i32
    %c0_i32_0 = arith.constant 0 : i32
    %c0_i32_1 = arith.constant 0 : i32
    return %c0_i32, %c0_i32_0 : i32, i32
  }
  func.func @transform_15(%arg0: i32) -> (i32, i32, i32) {
    %c0_i32 = arith.constant 0 : i32
    %c0_i32_0 = arith.constant 0 : i32
    %c0_i32_1 = arith.constant 0 : i32
    return %arg0, %c0_i32, %c0_i32_0 : i32, i32, i32
  }
}

</mosaic_0001>

<bundles_post_ra>
// kernel: tpu_custom_call.1
= control target key start
LH: loop header
LB: loop body
LE: loop exit
PB: predicated region body
PF: predicated region fallthrough
CT: control target
= control target key end

     0   :  { %s1669_s0 = inlined_call_operand.vmem [shape: f32[2,8,256], index: 0, kind: input, shape index: {}]   ;;  %s1670_s1 = inlined_call_operand.vmem [shape: f32[8,8], index: 1, kind: input, shape index: {}]   ;;  %s1671_s2 = inlined_call_operand.vmem [shape: f32[8,1], index: 2, kind: input, shape index: {}]   ;;  %s1672_s3 = inlined_call_operand.vmem [shape: f32[8,1], index: 3, kind: input, shape index: {}]   ;;  %s1673_s4 = inlined_call_operand.vmem [shape: f32[4,72], index: 4, kind: input, shape index: {}]   ;;  %s1674_s5 = inlined_call_operand.vmem [shape: f32[4,1], index: 5, kind: input, shape index: {}]   ;;  %s1675_s6 = inlined_call_operand.vmem [shape: f32[4,1], index: 6, kind: input, shape index: {}]   ;;  %s1676_s7 = inlined_call_operand.vmem [shape: f32[9,256], index: 7, kind: input, shape index: {}]   ;;  %s1677_s8 = inlined_call_operand.vmem [shape: f32[256,64], index: 8, kind: input, shape index: {}]   ;;  %s1678_s9 = inlined_call_operand.vmem [shape: f32[16,4], index: 9, kind: input, shape index: {}]   ;;  %s1679_s10 = inlined_call_operand.vmem [shape: f32[16,1], index: 10, kind: input, shape index: {}]   ;;  %s1680_s11 = inlined_call_operand.vmem [shape: f32[16,1], index: 11, kind: input, shape index: {}]   ;;  %s1681_s12 = inlined_call_operand.vmem [shape: f32[16,8], index: 12, kind: input, shape index: {}]   ;;  %s1682_s13 = inlined_call_operand.vmem [shape: f32[16,1], index: 13, kind: input, shape index: {}]   ;;  %s1683_s14 = inlined_call_operand.vmem [shape: f32[16,1], index: 14, kind: input, shape index: {}]   ;;  %s1684_s15 = inlined_call_operand.hbm [shape: f32[2,16,64], index: 15, kind: output, shape index: {}]  }
   0x1   :  { %1688 = sst [smem:[#allocation8_spill]] %s1669_s0 }
   0x2   :  { %1689 = sst [smem:[#allocation9_spill]] %s1670_s1 }
   0x3   :  { %20 = vsyncpa [#allocation3], 0 }
   0x4   :  { %22 = vsyncpa [#allocation3 + $0x1], 0  ;;  %s1272_s18 = smov 0   ;;  %s1274_s19 = smov 0  }
   0x5   :  { %s1276_s20 = smov 0   ;;  %s1278_s21 = smov 0  }
   0x6 LB: > { %1690 = sst [smem:[#allocation5_spill]] %s1175_s20  ;;  %s1293_s22 = sadd.s32 4294967295, %s1179_s21   ;;  %s1179_s21 = sphi %s1278_s21, %s1697_s21   ;;  %s1175_s20 = sphi %s1276_s20, %s1699_s20   ;;  %s1171_s19 = sphi %s1274_s19, %s1701_s19   ;;  %s1167_s18 = sphi %s1272_s18, %s1700_s18  }
   0x7   : > { %s1039_s23 = sadd.s32 4294967294, %s1179_s21   ;;  %s1297_s24 = sadd.s32 1, %s1179_s21  }
   0x8   : > { %1691 = sst [smem:[#allocation6_spill]] %s1297_s24  ;;  %s355_s25 = sadd.s32 1, %s1175_s20 }
   0x9   : > { %s352_s26 = ssub.s32 %s1179_s21, %s1297_s24  ;;  %p365_p0 = scmp.ne.s32.totalorder %s1175_s20, %s1171_s19 }
   0xa   : > { %p353_p1 = scmp.eq.s32.totalorder %s352_s26, 0  ;;  %p366_p2 = scmp.eq.s32.totalorder %s1293_s22, 1 }
   0xb   : > { %p371_p3 = scmp.ne.s32.totalorder %s1171_s19, %s1167_s18  ;;  %p372_p4 = scmp.eq.s32.totalorder %s1039_s23, 1 }
   0xc   : > { %s1308_s27 = scalar_select %p353_p1, %s1175_s20, %s355_s25  }
   0xd   : > { %p1310_p5 = por %p366_p2, %p365_p0  ;;  %p1314_p6 = por %p372_p4, %p371_p3 }
   0xe   : > { %1692 = sst [smem:[#allocation7_spill]] %s1308_s27  ;;  %p1042_p7 = scmp.ge.s32.totalorder %s1179_s21, 1 }
   0xf   : > { %p440_p8 = scmp.lt.s32.totalorder %s1179_s21, 3 }
  0x11   : > { %p441_p9 = pnand %p1042_p7, %p440_p8 }
  0x12   : > { %p488_p10 = scmp.lt.s32.totalorder (!%p441_p9), %s1293_s22, 1  ;;  %s1695_s0 = sld [smem:[#allocation8_spill]] (!%p441_p9) }
  0x13   : > { %444 = sbr.rel (%p441_p9) target bundleno = 735 (0x2df), region = 80  ;;  %s1696_s1 = sld [smem:[#allocation9_spill]] (!%p441_p9) }
  0x14   : > { %s1182_s20 = smov (!%p441_p9), 113   ;;  %s1183_s24 = smov (!%p441_p9), 112  }
  0x15   : > { %s1187_s25 = smov (!%p441_p9), 16   ;;  %s1188_s26 = smov (!%p441_p9), 1  }
  0x18   : > { %v540_v0 = vld [vmem:[%s1671_s2] sm:$0xff]  ;;  %v1181_v1 = vmov 0   ;;  %s489_s17 = scalar_select %p488_p10, %s1293_s22, 1  ;;  %vm496_vm0 = vcmask 64512   ;;  %v868_v17 = vld [vmem:[%s1679_s10 + $0x8] sm:$0xff]  ;;  %v566_v21 = vlaneseq  ;;  %v1399_v43 = vld [vmem:[%s1677_s8 + $0x78] sm:$0xff] }
  0x19   : > { %1112 = vset.pattern.permute.xlu0 %v1181_v1  ;;  %1113 = vset.pattern.permute.xlu1 %v1181_v1  ;;  %v495_v2 = vld [vmem:[%s1696_s1] sm:$0xff]  ;;  %v941_v19 = vld [vmem:[%s1683_s14 + $0x8] sm:$0xff]  ;;  %v1115_v26 = vld [vmem:[%s1676_s7 + $0x10] ss:$0 sm:$0xff]  ;;  %vm657_vm9 = vcmask 588800   ;;  %vm840_vm10 = vcmask 1043456  }
  0x1a   : > { %543 = vperm.xlu0 %1112, %v540_v0   ;;  %1114 = vset.pattern.permute.xlu2 %v1181_v1  ;;  %s1060_s23 = sshll.u32 %s489_s17, 4  ;;  %v548_v5 = vld [vmem:[%s1672_s3] sm:$0xff]  ;;  %s1185_s17 = smov 127   ;;  %v1374_v25 = vand.u32 127, %v566_v21  ;;  %v1116_v27 = vld [vmem:[%s1676_s7 + $0x18] ss:$0 sm:$0xff] }
  0x1b   : > { %s492_s27 = scalar_lea.vmem %s1695_s0, %s1060_s23  ;;  %s1186_s23 = smov 15   ;;  %v701_v16 = vld [vmem:[%s1674_s5] sm:$0xf]  ;;  %v1392_v29 = vld [vmem:[%s1676_s7 + $0x8] sm:$0xff]  ;;  %v1409_v46 = vld [vmem:[%s1677_s8 + $0xf8] sm:$0xff]  ;;  %vm833_vm11 = vcmask 31744  }
  0x1c   : > { %v1331_v3 = vld [vmem:[%s492_s27] sm:$0xff]  ;;  %v1333_v4 = vld [vmem:[%s492_s27 + $0x8] sm:$0xff]  ;;  %s1184_s27 = smov 111   ;;  %vm638_vm1 = vcmp.lt.s32.totalorder %v1374_v25, 112  ;;  %vm649_vm2 = vcmp.lt.s32.totalorder %v1374_v25, 111  ;;  %v642_v32 = vperm.slane %v1392_v29, 7 }
  0x1d   : > { %515 = vmatpush.msra.mxu0 %v1331_v3  ;;  %535 = vmatpush.msra.mxu1 %v1333_v4  ;;  %v881_v18 = vld [vmem:[%s1680_s11] sm:$0xff]  ;;  %vm616_vm3 = vcmp.lt.s32.totalorder %v1374_v25, 127  ;;  %vm627_vm4 = vcmp.lt.s32.totalorder %v1374_v25, 113  ;;  %v631_v45 = vperm.slane %v1392_v29, 6  ;;  %v1414_v47 = vld [vmem:[%s1677_s8 + $0x70] sm:$0xff]  ;;  %v620_v51 = vperm.slane %v1392_v29, 5 }
  0x1e   : > { %1046 = vmatmul.msk.f32.vlgmr.msra.gmra.mxu0 %vm496_vm0, %v495_v2  ;;  %1047 = vmatmul.msk.f32.vlgmr.msra.gmra.mxu1 %vm496_vm0, %v495_v2  ;;  %v1387_v28 = vld [vmem:[%s1676_s7] sm:$0xff]  ;;  %v1425_v52 = vld [vmem:[%s1677_s8 + $0xf0] sm:$0xff]  ;;  %v609_v57 = vperm.slane %v1392_v29, 4  ;;  %v1436_v58 = vld [vmem:[%s1677_s8 + $0x68] sm:$0xff]  ;;  %vm601_vm5 = vcmp.lt.s32.totalorder %v1374_v25, 1  ;;  %vm579_vm6 = vcmp.lt.s32.totalorder %v1374_v25, 16 }
  0x1f   : > { %v641_v31 = vperm.slane %v1387_v28, 7  ;;  %751 = vmatpush.msrb.mxu0 %v1399_v43  ;;  %v630_v44 = vperm.slane %v1387_v28, 6  ;;  %771 = vmatpush.msrb.mxu1 %v1409_v46  ;;  %v619_v50 = vperm.slane %v1387_v28, 5  ;;  %v709_v53 = vld [vmem:[%s1675_s6] sm:$0xf]  ;;  %v608_v61 = vperm.slane %v1387_v28, 4 }
  0x20   : > { %v1443_v62 = vld [vmem:[%s1677_s8 + $0xe8] sm:$0xff]  ;;  %vm590_vm7 = vcmp.lt.s32.totalorder %v1374_v25, 15  ;;  %vm568_vm8 = vcmp.lt.s32.totalorder %v1374_v25, 17  ;;  %v739_v25 = vld [vmem:[%s1677_s8 + $0xa0] sm:$0xff]  ;;  %vm958_vm12 = vcmask 523264   ;;  %s1137_s0 = scalar_lea.hbm %s1684_s15, 32 }
  0x21   : > { %752 = vmatpush.msrb.mxu0 %v1414_v47  ;;  %772 = vmatpush.msrb.mxu1 %v1425_v52  ;;  %v1494_v21 = vld [vmem:[%s1677_s8 + $0x48] sm:$0xff] }
  0x22   : > { %551 = vperm.xlu0 %1112, %v548_v5   ;;  %v1450_v5 = vld [vmem:[%s1677_s8 + $0x60] sm:$0xff] }
  0x23   : > { %753 = vmatpush.msrb.mxu0 %v1436_v58  ;;  %773 = vmatpush.msrb.mxu1 %v1443_v62 }
  0x25   : > { %754 = vmatpush.msrb.mxu0 %v1450_v5 }
  0x8c   : > { %v544_v6 = vpop.permute.xlu0 %543 }
  0x94   : > { %v552_v9 = vpop.permute.xlu0 %551 }
  0x9b   : > { %v517_v7 = vpop.f32.mrf.mxu0  ;;  %v537_v10 = vpop.f32.mrf.mxu1 }
  0x9c   : > { %v546_v8 = vmul.f32 %v544_v6, %v517_v7  ;;  %v547_v13 = vmul.f32 %v544_v6, %v537_v10  ;;  %v1455_v6 = vld [vmem:[%s1677_s8 + $0xe0] sm:$0xff]  ;;  %v605_v10 = vperm.slane %v1392_v29, 3 }
  0x9d   : > { %774 = vmatpush.msrb.mxu1 %v1455_v6 }
  0x9e   : > { %v554_v11 = vadd.f32 %v552_v9, %v546_v8  ;;  %v555_v14 = vadd.f32 %v552_v9, %v547_v13  ;;  %v604_v9 = vperm.slane %v1387_v28, 3  ;;  %v1472_v13 = vld [vmem:[%s1677_s8 + $0xd8] sm:$0xff] }
  0x9f   : > { %775 = vmatpush.msrb.mxu1 %v1472_v13 }
  0xa0   : > { %v1342_v12 = vmax.f32 %v554_v11, 0.0  ;;  %v1347_v15 = vmax.f32 %v555_v14, 0.0  ;;  %v1467_v11 = vld [vmem:[%s1677_s8 + $0x58] sm:$0xff]  ;;  %v926_v14 = vld [vmem:[%s1682_s13] sm:$0xff] }
  0xa1   : > { %755 = vmatpush.msrb.mxu0 %v1467_v11 }
  0xa2   : > { %623 = vrot.lane.b32.xlu0 %v1342_v12, %s1182_s20  ;;  %634 = vrot.lane.b32.xlu2 %v1342_v12, %s1183_s24  ;;  %v611_v7 = vmul.f32 %v609_v57, %v1347_v15  ;;  %v610_v8 = vmul.f32 %v608_v61, %v1342_v12 }
  0xa3   : > { %645 = vrot.lane.b32.xlu1 %v1342_v12, %s1184_s27 }
  0xaa   : > { %614 = vrot.lane.b32.xlu0 %v1347_v15, %s1185_s17  ;;  %636 = vrot.lane.b32.xlu2 %v1347_v15, %s1183_s24 }
  0xab   : > { %647 = vrot.lane.b32.xlu1 %v1347_v15, %s1184_s27 }
  0xb2   : > { %586 = vrot.lane.b32.xlu0 %v1342_v12, %s1186_s23  ;;  %612 = vrot.lane.b32.xlu2 %v1342_v12, %s1185_s17 }
  0xb3   : > { %625 = vrot.lane.b32.xlu1 %v1347_v15, %s1182_s20  ;;  %s1189_s20 = smov 17  }
  0xba   : > { %577 = vrot.lane.b32.xlu0 %v1347_v15, %s1187_s25  ;;  %599 = vrot.lane.b32.xlu2 %v1347_v15, %s1188_s26 }
  0xbb   : > { %597 = vrot.lane.b32.xlu1 %v1342_v12, %s1188_s26  ;;  %s1061_s26 = sshll.u32 %s1293_s22, 4 }
  0xc2   : > { %704 = vperm.xlu0 %1112, %v701_v16   ;;  %575 = vrot.lane.b32.xlu2 %v1342_v12, %s1187_s25 }
  0xc3   : > { %588 = vrot.lane.b32.xlu1 %v1347_v15, %s1186_s23  ;;  %s973_s23 = scalar_lea.hbm %s1684_s15, %s1061_s26 }
  0xc4   : > { %s976_s27 = sshll.u32 %s973_s23, 4  ;;  %s977_s27 = int_to_ptr.hbm [resolvable:$true] %s976_s27 }
  0xc5   : > { %s1131_s30 = sshra.s32 %s977_s27, 4  ;;  %s1132_s30 = int_to_ptr.hbm [resolvable:$true] %s1131_s30 }
  0xc6   : > { %p1138_p0 = scmp.lt.s32.totalorder %s1132_s30, %s1684_s15 }
  0xca   : > { %876 = vperm.xlu0 %1112, %v868_v17   ;;  %564 = vrot.lane.b32.xlu2 %v1347_v15, %s1189_s20  ;;  %v1482_v17 = vld [vmem:[%s1677_s8 + $0x50] sm:$0xff] }
  0xcb   : > { %562 = vrot.lane.b32.xlu1 %v1342_v12, %s1189_s20  ;;  %756 = vmatpush.msrb.mxu0 %v1482_v17  ;;  %s485_s20 = sand.u32 1, %s1171_s19  }
  0xcc   : > { %s1043_s17 = sshll.u32 %s485_s20, 4  ;;  %s962_s22 = scalar_lea.sflag [#allocation3], %s485_s20 }
  0xcd   : > { %757 = vmatpush.msrb.mxu0 %v1494_v21  ;;  %s487_s25 = scalar_lea.vmem [#allocation2], %s1043_s17  ;;  %s1133_s17 = scalar_lea.hbm %s1132_s30, 16 }
  0xce   : > { %s974_s24 = sshll.u32 %s487_s25, 4  ;;  %p1134_p11 = scmp.ne.s32.totalorder %s1132_s30, %s1133_s17  ;;  %s975_s24 = int_to_ptr.vmem [resolvable:$true] %s974_s24 }
  0xcf   : > { %p1139_p1 = scmp.lt.s32.totalorder %s1137_s0, %s1133_s17 }
  0xd0   : > { %p1135_p12 = pnand %p1134_p11, %p1310_p5 }
  0xd1   : > { %p1140_p2 = por %p1139_p1, %p1138_p0 }
  0xd2   : > { %885 = vperm.xlu0 %1112, %v881_v18   ;;  %v1487_v18 = vld [vmem:[%s1677_s8 + $0xd0] sm:$0xff]  ;;  %p1136_p13 = pneg %p1135_p12 }
  0xd3   : > { %712 = vperm.xlu1 %1113, %v709_v53   ;;  %776 = vmatpush.msrb.mxu1 %v1487_v18  ;;  %v571_v53 = vperm.slane %v1387_v28, 0 }
  0xd4   : > { %p1141_p3 = pnand %p1140_p2, %p1136_p13 }
  0xda   : > { %949 = vperm.xlu0 %1112, %v941_v19  }
  0xdb   : > { %930 = vperm.xlu1 %1113, %v926_v14   ;;  %v867_v14 = vld [vmem:[%s1679_s10] sm:$0xff] }
  0xdc   : > { %871 = vperm.xlu2 %1114, %v867_v14  }
  0xfc   : > { %v635_v20 = vpop.permute.xlu2 %634 }
 0x104   : > { %v637_v23 = vpop.permute.xlu2 %636 }
 0x105   : > { %v639_v33 = vsel %vm638_vm1, %v635_v20, %v637_v23  ;;  %v640_v34 = vsel %vm638_vm1, %v637_v23, %v635_v20 }
 0x106   : > { %v643_v41 = vmul.f32 %v641_v31, %v639_v33  ;;  %v644_v42 = vmul.f32 %v642_v32, %v640_v34  ;;  %v1515_v31 = vld [vmem:[%s1677_s8 + $0xc0] sm:$0xff]  ;;  %v582_v34 = vperm.slane %v1387_v28, 1 }
 0x10c   : > { %v613_v38 = vpop.permute.xlu2 %612 }
 0x114   : > { %v624_v22 = vpop.permute.xlu0 %623  ;;  %v600_v0 = vpop.permute.xlu2 %599 }
 0x115   : > { %v646_v24 = vpop.permute.xlu1 %645 }
 0x11c   : > { %v615_v35 = vpop.permute.xlu0 %614 }
 0x11d   : > { %v648_v30 = vpop.permute.xlu1 %647  ;;  %v617_v48 = vsel %vm616_vm3, %v613_v38, %v615_v35  ;;  %v618_v54 = vsel %vm616_vm3, %v615_v35, %v613_v38  ;;  %v583_v35 = vperm.slane %v1392_v29, 1 }
 0x11e   : > { %v650_v36 = vsel %vm649_vm2, %v646_v24, %v648_v30  ;;  %v651_v37 = vsel %vm649_vm2, %v648_v30, %v646_v24  ;;  %v621_v1 = vmul.f32 %v619_v50, %v617_v48  ;;  %v622_v2 = vmul.f32 %v620_v51, %v618_v54  ;;  %v576_v24 = vpop.permute.xlu2 %575  ;;  %v1510_v30 = vld [vmem:[%s1677_s8 + $0x40] sm:$0xff]  ;;  %v741_v50 = vld [vmem:[%s1677_s8 + $0xb0] sm:$0xff]  ;;  %v724_v51 = vld [vmem:[%s1677_s8 + $0x28] sm:$0xff] }
 0x11f   : > { %v654_v39 = vmul.f32 %v1115_v26, %v650_v36  ;;  %v655_v40 = vmul.f32 %v1116_v27, %v651_v37  ;;  %v593_v26 = vperm.slane %v1387_v28, 2  ;;  %v594_v27 = vperm.slane %v1392_v29, 2  ;;  %758 = vmatpush.msrb.mxu0 %v1510_v30  ;;  %v1526_v36 = vld [vmem:[%s1677_s8 + $0x38] sm:$0xff]  ;;  %v882_v37 = vld [vmem:[%s1680_s11 + $0x8] sm:$0xff] }
 0x120   : > { %890 = vperm.xlu1 %1113, %v882_v37   ;;  %v572_v54 = vperm.slane %v1392_v29, 0  ;;  %v722_v28 = vld [vmem:[%s1677_s8 + $0x18] sm:$0xff] }
 0x121   : > { %668 = vmatpush.msra.mxu2 %v654_v39  ;;  %688 = vmatpush.msra.mxu3 %v655_v40 }
 0x122   : > { %759 = vmatpush.msrb.mxu0 %v1526_v36 }
 0x123   : > { %669 = vmatpush.msra.mxu2 %v643_v41  ;;  %689 = vmatpush.msra.mxu3 %v644_v42  ;;  %v1536_v41 = vld [vmem:[%s1677_s8 + $0xb8] sm:$0xff] }
 0x124   : > { %v587_v63 = vpop.permute.xlu0 %586 }
 0x125   : > { %v626_v49 = vpop.permute.xlu1 %625 }
 0x126   : > { %v628_v55 = vsel %vm627_vm4, %v624_v22, %v626_v49  ;;  %v629_v56 = vsel %vm627_vm4, %v626_v49, %v624_v22  ;;  %v1499_v22 = vld [vmem:[%s1677_s8 + $0xc8] sm:$0xff]  ;;  %v565_v57 = vpop.permute.xlu2 %564 }
 0x127   : > { %v632_v59 = vmul.f32 %v630_v44, %v628_v55  ;;  %v633_v60 = vmul.f32 %v631_v45, %v629_v56  ;;  %777 = vmatpush.msrb.mxu1 %v1499_v22  ;;  %v1542_v45 = vld [vmem:[%s1677_s8 + $0x30] sm:$0xff]  ;;  %v740_v55 = vld [vmem:[%s1677_s8 + $0xa8] sm:$0xff]  ;;  %v723_v56 = vld [vmem:[%s1677_s8 + $0x20] sm:$0xff] }
 0x128   : > { %760 = vmatpush.msrb.mxu0 %v1542_v45 }
 0x129   : > { %670 = vmatpush.msra.mxu2 %v632_v59  ;;  %690 = vmatpush.msra.mxu3 %v633_v60 }
 0x12a   : > { %778 = vmatpush.msrb.mxu1 %v1515_v31  ;;  %761 = vmatpush.msrb.mxu0 %v724_v51 }
 0x12b   : > { %671 = vmatpush.msra.mxu2 %v621_v1  ;;  %691 = vmatpush.msra.mxu3 %v622_v2  ;;  %v738_v1 = vld [vmem:[%s1677_s8 + $0x98] sm:$0xff]  ;;  %v721_v2 = vld [vmem:[%s1677_s8 + $0x10] sm:$0xff] }
 0x12c   : > { %v578_v23 = vpop.permute.xlu0 %577  ;;  %779 = vmatpush.msrb.mxu1 %v1536_v41  ;;  %762 = vmatpush.msrb.mxu0 %v723_v56 }
 0x12d   : > { %692 = vmatpush.msra.mxu3 %v611_v7  ;;  %v598_v12 = vpop.permute.xlu1 %597  ;;  %672 = vmatpush.msra.mxu2 %v610_v8  ;;  %v580_v32 = vsel %vm579_vm6, %v576_v24, %v578_v23  ;;  %v581_v38 = vsel %vm579_vm6, %v578_v23, %v576_v24  ;;  %v737_v7 = vld [vmem:[%s1677_s8 + $0x90] sm:$0xff]  ;;  %v720_v8 = vld [vmem:[%s1677_s8 + $0x8] sm:$0xff]  ;;  %v831_v23 = vld [vmem:[%s1678_s9] sm:$0xff] }
 0x12e   : > { %v602_v15 = vsel %vm601_vm5, %v598_v12, %v600_v0  ;;  %v603_v16 = vsel %vm601_vm5, %v600_v0, %v598_v12  ;;  %v584_v48 = vmul.f32 %v582_v34, %v581_v38  ;;  %v585_v49 = vmul.f32 %v583_v35, %v580_v32  ;;  %780 = vmatpush.msrb.mxu1 %v741_v50  ;;  %v656_v0 = vld [vmem:[%s1673_s4] sm:$0xf]  ;;  %v832_v24 = vld [vmem:[%s1678_s9 + $0x8] sm:$0xff] }
 0x12f   : > { %v606_v19 = vmul.f32 %v604_v9, %v603_v16  ;;  %v607_v20 = vmul.f32 %v605_v10, %v602_v15  ;;  %763 = vmatpush.msrb.mxu0 %v722_v28 }
 0x130   : > { %781 = vmatpush.msrb.mxu1 %v740_v55 }
 0x131   : > { %673 = vmatpush.msra.mxu2 %v606_v19  ;;  %693 = vmatpush.msra.mxu3 %v607_v20  ;;  %v896_v19 = vld [vmem:[%s1681_s12 + $0x8] sm:$0xff] }
 0x132   : > { %782 = vmatpush.msrb.mxu1 %v739_v25  ;;  %764 = vmatpush.msrb.mxu0 %v721_v2 }
 0x134   : > { %783 = vmatpush.msrb.mxu1 %v738_v1  ;;  %765 = vmatpush.msrb.mxu0 %v720_v8 }
 0x135   : > { %v589_v33 = vpop.permute.xlu1 %588 }
 0x136   : > { %v591_v39 = vsel %vm590_vm7, %v587_v63, %v589_v33  ;;  %v592_v40 = vsel %vm590_vm7, %v589_v33, %v587_v63  ;;  %784 = vmatpush.msrb.mxu1 %v737_v7 }
 0x137   : > { %v595_v42 = vmul.f32 %v593_v26, %v592_v40  ;;  %v596_v44 = vmul.f32 %v594_v27, %v591_v39  ;;  %v872_v26 = vpop.permute.xlu2 %871 }
 0x139   : > { %674 = vmatpush.msra.mxu2 %v595_v42  ;;  %694 = vmatpush.msra.mxu3 %v596_v44 }
 0x13b   : > { %675 = vmatpush.msra.mxu2 %v584_v48  ;;  %695 = vmatpush.msra.mxu3 %v585_v49 }
 0x13d   : > { %v563_v59 = vpop.permute.xlu1 %562 }
 0x13e   : > { %v569_v29 = vsel %vm568_vm8, %v563_v59, %v565_v57  ;;  %v570_v60 = vsel %vm568_vm8, %v565_v57, %v563_v59 }
 0x13f   : > { %v573_v61 = vmul.f32 %v571_v53, %v570_v60  ;;  %v574_v63 = vmul.f32 %v572_v54, %v569_v29 }
 0x141   : > { %676 = vmatpush.msra.mxu2 %v573_v61  ;;  %696 = vmatpush.msra.mxu3 %v574_v63 }
 0x142   : > { %1048 = vmatmul.msk.f32.vlgmr.msra.gmra.mxu2 %vm657_vm9, %v656_v0  ;;  %1049 = vmatmul.msk.f32.vlgmr.msra.gmra.mxu3 %vm657_vm9, %v656_v0 }
 0x143   : > { %791 = vmatpush.msrb.mxu2 %v1399_v43  ;;  %811 = vmatpush.msrb.mxu3 %v1409_v46  ;;  %v736_v43 = vld [vmem:[%s1677_s8 + $0x88] sm:$0xff]  ;;  %v719_v46 = vld [vmem:[%s1677_s8] sm:$0xff] }
 0x144   : > { %785 = vmatpush.msrb.mxu1 %v736_v43  ;;  %766 = vmatpush.msrb.mxu0 %v719_v46 }
 0x145   : > { %792 = vmatpush.msrb.mxu2 %v1414_v47  ;;  %812 = vmatpush.msrb.mxu3 %v1425_v52  ;;  %v735_v47 = vld [vmem:[%s1677_s8 + $0x80] sm:$0xff]  ;;  %v705_v52 = vpop.permute.xlu0 %704  ;;  %v713_v9 = vpop.permute.xlu1 %712 }
 0x146   : > { %786 = vmatpush.msrb.mxu1 %v735_v47 }
 0x147   : > { %793 = vmatpush.msrb.mxu2 %v1436_v58  ;;  %813 = vmatpush.msrb.mxu3 %v1443_v62 }
 0x149   : > { %794 = vmatpush.msrb.mxu2 %v1450_v5  ;;  %814 = vmatpush.msrb.mxu3 %v1455_v6 }
 0x14b   : > { %795 = vmatpush.msrb.mxu2 %v1467_v11  ;;  %815 = vmatpush.msrb.mxu3 %v1472_v13 }
 0x14d   : > { %796 = vmatpush.msrb.mxu2 %v1482_v17  ;;  %816 = vmatpush.msrb.mxu3 %v1487_v18  ;;  %v895_v18 = vld [vmem:[%s1681_s12] sm:$0xff]  ;;  %v877_v27 = vpop.permute.xlu0 %876  ;;  %v931_v32 = vpop.permute.xlu1 %930 }
 0x14f   : > { %797 = vmatpush.msrb.mxu2 %v1494_v21  ;;  %817 = vmatpush.msrb.mxu3 %v1499_v22 }
 0x151   : > { %798 = vmatpush.msrb.mxu2 %v1510_v30  ;;  %818 = vmatpush.msrb.mxu3 %v1515_v31 }
 0x153   : > { %799 = vmatpush.msrb.mxu2 %v1526_v36  ;;  %819 = vmatpush.msrb.mxu3 %v1536_v41 }
 0x155   : > { %800 = vmatpush.msrb.mxu2 %v1542_v45  ;;  %820 = vmatpush.msrb.mxu3 %v741_v50  ;;  %v886_v33 = vpop.permute.xlu0 %885 }
 0x157   : > { %801 = vmatpush.msrb.mxu2 %v724_v51  ;;  %821 = vmatpush.msrb.mxu3 %v740_v55 }
 0x159   : > { %802 = vmatpush.msrb.mxu2 %v723_v56  ;;  %822 = vmatpush.msrb.mxu3 %v739_v25 }
 0x15b   : > { %803 = vmatpush.msrb.mxu2 %v722_v28  ;;  %823 = vmatpush.msrb.mxu3 %v738_v1 }
 0x15d   : > { %804 = vmatpush.msrb.mxu2 %v721_v2  ;;  %824 = vmatpush.msrb.mxu3 %v737_v7  ;;  %v950_v49 = vpop.permute.xlu0 %949 }
 0x15f   : > { %805 = vmatpush.msrb.mxu2 %v720_v8  ;;  %825 = vmatpush.msrb.mxu3 %v736_v43 }
 0x161   : > { %806 = vmatpush.msrb.mxu2 %v719_v46  ;;  %826 = vmatpush.msrb.mxu3 %v735_v47 }
 0x162   : > { %807 = vmatmul.f32.vlgmr.msrb.gmra.mxu2 %v1331_v3  ;;  %827 = vmatmul.f32.vlgmr.msrb.gmra.mxu3 %v1333_v4  ;;  %v927_v3 = vld [vmem:[%s1682_s13 + $0x8] sm:$0xff]  ;;  %v940_v4 = vld [vmem:[%s1683_s14] sm:$0xff] }
 0x163   : > { %935 = vperm.xlu2 %1114, %v927_v3  }
 0x16b   : > { %944 = vperm.xlu2 %1114, %v940_v4  }
 0x192   : > { %v891_v50 = vpop.permute.xlu1 %890 }
 0x1bd   : > { %v936_v30 = vpop.permute.xlu2 %935 }
 0x1c5   : > { %v678_v58 = vpop.f32.mrf.mxu2  ;;  %v698_v62 = vpop.f32.mrf.mxu3 }
 0x1c6   : > { %v707_v5 = vmul.f32 %v705_v52, %v678_v58  ;;  %v708_v6 = vmul.f32 %v705_v52, %v698_v62  ;;  %v945_v35 = vpop.permute.xlu2 %944 }
 0x1c8   : > { %v715_v10 = vadd.f32 %v713_v9, %v707_v5  ;;  %v716_v11 = vadd.f32 %v713_v9, %v708_v6 }
 0x1ca   : > { %v717_v13 = vmax.f32 %v715_v10, 0.0  ;;  %v718_v12 = vmax.f32 %v716_v11, 0.0 }
 0x1cc   : > { %767 = vmatmul.f32.vlgmr.msrb.gmra.mxu0 %v717_v13  ;;  %787 = vmatmul.f32.vlgmr.msrb.gmra.mxu1 %v718_v12 }
 0x1e5   : > { %v808_v15 = vpop.f32.mrf.mxu2  ;;  %v828_v16 = vpop.f32.mrf.mxu3 }
 0x1e6   : > { %v829_v17 = vadd.f32 %v828_v16, %v808_v15 }
 0x1e8   : > { %918 = vmatpush.msra.mxu1 %v829_v17 }
 0x1e9   : > { %1053 = vmatmul.msk.f32.vlgmr.msra.gmra.mxu1 %vm496_vm0, %v895_v18 }
 0x1f1   : > { %1054 = vmatmul.msk.f32.gmra.mxu1 %vm496_vm0, %v896_v19 }
 0x249   : > { %v768_v20 = vpop.f32.mrf.mxu0  ;;  %v788_v21 = vpop.f32.mrf.mxu1 }
 0x24a   : > { %v789_v22 = vadd.f32 %v788_v21, %v768_v20 }
 0x24c   : > { %1050 = vmatpush.msk.msra.mxu0 %vm840_vm10, %v789_v22 }
 0x24d   : > { %1051 = vmatmul.msk.f32.vlgmr.msra.gmra.mxu0 %vm833_vm11, %v831_v23 }
 0x255   : > { %1052 = vmatmul.msk.f32.gmra.mxu0 %vm833_vm11, %v832_v24 }
 0x266   : > { %v920_v31 = vpop.f32.mrf.mxu1 }
 0x267   : > { %v938_v34 = vmul.f32 %v931_v32, %v920_v31 }
 0x269   : > { %v952_v38 = vadd.f32 %v945_v35, %v938_v34 }
 0x26e   : > { %v923_v40 = vpop.f32.mrf.mxu1 }
 0x26f   : > { %v939_v42 = vmul.f32 %v936_v30, %v923_v40 }
 0x271   : > { %v953_v51 = vadd.f32 %v950_v49, %v939_v42 }
 0x2ca   : > { %v861_v36 = vpop.f32.mrf.mxu0 }
 0x2cb   : > { %v879_v37 = vmul.f32 %v872_v26, %v861_v36 }
 0x2cd   : > { %v893_v39 = vadd.f32 %v886_v33, %v879_v37 }
 0x2cf   : > { %v954_v41 = vadd.f32 %v952_v38, %v893_v39 }
 0x2d1   : > { %v956_v44 = vmax.f32 %v954_v41, 0.0 }
 0x2d2   : > { %v864_v45 = vpop.f32.mrf.mxu0 }
 0x2d3   : > { %959 = vst.msk [vmem:[%s487_s25] sm:$0xff] %vm958_vm12, %v956_v44  ;;  %v880_v48 = vmul.f32 %v877_v27, %v864_v45 }
 0x2d5   : > { %v894_v53 = vadd.f32 %v891_v50, %v880_v48 }
 0x2d7   : > { %v955_v54 = vadd.f32 %v953_v51, %v894_v53 }
 0x2d9   : > { %v957_v55 = vmax.f32 %v955_v54, 0.0 }
 0x2db   : > { %960 = vst.msk [vmem:[%s487_s25 + $0x8] sm:$0xff] %vm958_vm12, %v957_v55 }
 0x2dc   : > { %1144 = shalt.err (!%p1141_p3)
}
 0x2dd   : > { %s1190_s20 = smov 128   ;;  %s1191_s25 = smov 8  }
 0x2de   : > { %1062 = dma.vmem_to_hbm [thread:$0]  (%p1310_p5), %s975_s24, 256, %s977_s27, %s962_s22, %s1190_s20, %s1190_s20, %s1191_s25  }
 0x2df PF: > { %p1068_p4 = scmp.ge.s32.totalorder %s1179_s21, 2  ;;  %s991_s26 = sand.u32 1, %s1167_s18  }
 0x2e0   : > { %s992_s1 = scalar_lea.sflag [#allocation3], %s991_s26 }
 0x2e1   : > { %p1065_p7 = pnand %p1068_p4, %p1314_p6 }
 0x2e3   : > { %p1066_p8 = pneg %p1065_p7 }
 0x2e5   : > { %1162 = dma.done.wait (%p1066_p8), %s992_s1, 256  }
 0x2e6   : > { %1164 = vsyncadd (%p1066_p8), %s992_s1, 4294967040  ;;  %s1697_s21 = sld [smem:[#allocation6_spill]]  ;;  %s1700_s18 = smov %s1171_s19 }
 0x2e7   : > { %s1698_s0 = sld [smem:[#allocation5_spill]] }
 0x2e8   : > { %s1699_s20 = sld [smem:[#allocation7_spill]] }
 0x2ec   : > { %p25_p9 = scmp.ge.s32.totalorder %s1697_s21, 4  }
 0x2ed   : > { %s1701_s19 = smov %s1698_s0 }
 0x2ee   :  { %27 = sbr.rel (!%p25_p9) target bundleno = 6 (0x6), region = 115 }
 0x2f3   :  { %998 = vsyncpa [#allocation3], 1 }
 0x2f4   :  { %1000 = vsyncpa [#allocation3 + $0x1], 1 }

</bundles_post_ra>
